<compile_context>
chip_gen: v6e
topology: v6e:2x2x1
jax: 0.10.0
libtpu: 0.0.40
codegen_flags: <defaults>
</compile_context>

<pallas_src>
import jax
import jax.numpy as jnp
from jax.experimental import pallas as pl
from jax.experimental.pallas import tpu as pltpu


def _round_up(n, m):
    return ((n + m - 1) // m) * m


def _mlp_kernel(x_ref, w1t_ref, b1_ref, w2_ref, b2_ref, o_ref):
    # x_ref:   [TB, F] f32   (batch tile on sublanes, features on lanes)
    # w1t_ref: [F, H]  f32   (W1^T, VMEM-resident)
    # b1_ref:  [1, H]  f32
    # w2_ref:  [1, H]  f32   (W2 row)
    # b2_ref:  [1, 1]  f32
    # o_ref:   [TB, 1] f32   (native [B, 1] column output)

    # Hidden layer on the MXU, f32 accumulation, bias + ReLU on the VPU.
    h = jnp.dot(x_ref[...], w1t_ref[...],
                preferred_element_type=jnp.float32)            # [TB, H]
    h = jnp.maximum(h + b1_ref[...], 0.0)

    # Output layer (20 -> 1): broadcast-multiply (VPU) + lane reduction (XLU),
    # avoids pushing an N=1 RHS through the MXU.
    z = jnp.sum(h * w2_ref[...], axis=1, keepdims=True) + b2_ref[...]  # [TB, 1]

    # sigmoid(z) == 0.5 * (tanh(z/2) + 1): tanh runs on the EUP slot.
    o_ref[...] = 0.5 * (jnp.tanh(0.5 * z) + 1.0)


def _choose_tb(B, F, H):
    """Pick the batch-tile size (sublane axis, multiple of 8/128)."""
    B8 = _round_up(B, 8)
    if B8 <= 1024:
        # Small batch: single (or near-single) tile, exact fit for aligned B.
        return B8
    # VMEM budget (~12 MiB) for the streamed buffers:
    #   x double-buffer (2*F*4 B/row) + h temp (H*4 B/row) + out double-buffer.
    budget = 12 * 1024 * 1024
    per_row = 2 * F * 4 + H * 4 + 2 * 4
    tb = budget // per_row
    tb = min(tb, 65536)                              # multi-MiB steps are plenty
    tb = min(tb, _round_up(pl.cdiv(B, 2), 128))      # >=2 grid steps for v7x TCs
    tb = max(128, (tb // 128) * 128)
    return tb


def my_network_forward(x, w1, b1, w2, b2):
    """Fused 2-layer MLP forward (Linear -> ReLU -> Linear -> Sigmoid).

    x:  [B, F] float32
    w1: [H, F] (PyTorch layout), b1: [H]
    w2: [1, H] (PyTorch layout), b2: [1]
    returns: [B, 1] float32
    """
    x = jnp.asarray(x, jnp.float32)
    B, F = x.shape
    H = w1.shape[0]

    TB = _choose_tb(B, F, H)
    num_tiles = pl.cdiv(B, TB)

    # Tiny parameter relayouts only (H*F elements); x is left untouched in HBM.
    # TODO(synk): have the upstream producer emit bf16 features to halve the
    # HBM read of x; the kernel is purely HBM-bound on x.
    w1t = jnp.asarray(w1, jnp.float32).T                 # [F, H]  (== W1^T)
    b1_c = jnp.asarray(b1, jnp.float32).reshape(1, H)    # [1, H]
    w2_c = jnp.asarray(w2, jnp.float32).reshape(1, H)    # [1, H]
    b2_c = jnp.asarray(b2, jnp.float32).reshape(1, 1)    # [1, 1]

    cost = pl.CostEstimate(
        flops=2 * B * (F * H + H),
        transcendentals=B,
        bytes_accessed=B * F * 4 + B * 4 + F * H * 4 + 2 * H * 4 + 4,
    )

    out = pl.pallas_call(
        _mlp_kernel,
        out_shape=jax.ShapeDtypeStruct((B, 1), jnp.float32),
        grid=(num_tiles,),
        in_specs=[
            pl.BlockSpec((TB, F), lambda i: (i, 0)),   # x streams over batch
            pl.BlockSpec((F, H), lambda i: (0, 0)),    # weights stay resident
            pl.BlockSpec((1, H), lambda i: (0, 0)),
            pl.BlockSpec((1, H), lambda i: (0, 0)),
            pl.BlockSpec((1, 1), lambda i: (0, 0)),
        ],
        out_specs=pl.BlockSpec((TB, 1), lambda i: (i, 0)),
        compiler_params=pltpu.CompilerParams(
            dimension_semantics=("parallel",),
            vmem_limit_bytes=32 * 1024 * 1024,
        ),
        cost_estimate=cost,
    )(x, w1t, b1_c, w2_c, b2_c)

    return out


def init_params(key, n_features, hidden=20):
    """Deterministic PyTorch-style Linear init: U(-1/sqrt(fan_in), 1/sqrt(fan_in))."""
    k1, k2, k3, k4 = jax.random.split(key, 4)
    bound1 = 1.0 / jnp.sqrt(jnp.float32(n_features))
    bound2 = 1.0 / jnp.sqrt(jnp.float32(hidden))
    w1 = jax.random.uniform(k1, (hidden, n_features), jnp.float32, -bound1, bound1)
    b1 = jax.random.uniform(k2, (hidden,), jnp.float32, -bound1, bound1)
    w2 = jax.random.uniform(k3, (1, hidden), jnp.float32, -bound2, bound2)
    b2 = jax.random.uniform(k4, (1,), jnp.float32, -bound2, bound2)
    return w1, b1, w2, b2


if __name__ == "__main__":
    key = jax.random.PRNGKey(0)
    k_x, k_p = jax.random.split(key)

    batch = 8
    n_features = 32
    hidden = 20

    x = jax.random.normal(k_x, (batch, n_features), jnp.float32)
    w1, b1, w2, b2 = init_params(k_p, n_features, hidden)

    y = my_network_forward(x, w1, b1, w2, b2)
    y = jax.block_until_ready(y)

    # Pure-f32 JAX reference.
    h_ref = jnp.maximum(x @ w1.T + b1, 0.0)
    y_ref = jax.nn.sigmoid(h_ref @ w2.T + b2)

    assert y.shape == (batch, 1)
    assert jnp.allclose(y, y_ref, atol=5e-3, rtol=0.0), float(jnp.max(jnp.abs(y - y_ref)))

    print("KERNEL_OK")
</pallas_src>

<mosaic_0001>
module attributes {stable_mosaic.version = 11 : i64} {
  func.func @_mlp_kernel(%arg0: i32, %arg1: memref<8x32xf32, #tpu.memory_space<vmem>>, %arg2: memref<32x20xf32, #tpu.memory_space<vmem>>, %arg3: memref<1x20xf32, #tpu.memory_space<vmem>>, %arg4: memref<1x20xf32, #tpu.memory_space<vmem>>, %arg5: memref<1x1xf32, #tpu.memory_space<vmem>>, %arg6: memref<8x1xf32, #tpu.memory_space<vmem>>) attributes {dimension_semantics = [#tpu.dimension_semantics<parallel>], iteration_bounds = array<i64: 1>, scalar_prefetch = 0 : i64, scratch_operands = 0 : i64, tpu.core_type = #tpu.core_type<tc>, window_params = [{transform_indices = @transform_0, window_bounds = array<i64: 8, 32>}, {pipeline_mode = #tpu.pipeline_mode<synchronous>, transform_indices = @transform_1, window_bounds = array<i64: 32, 20>}, {pipeline_mode = #tpu.pipeline_mode<synchronous>, transform_indices = @transform_2, window_bounds = array<i64: 1, 20>}, {pipeline_mode = #tpu.pipeline_mode<synchronous>, transform_indices = @transform_3, window_bounds = array<i64: 1, 20>}, {pipeline_mode = #tpu.pipeline_mode<synchronous>, transform_indices = @transform_4, window_bounds = array<i64: 1, 1>}, {transform_indices = @transform_5, window_bounds = array<i64: 8, 1>}]} {
    %c0 = arith.constant 0 : index
    %c0_0 = arith.constant 0 : index
    %0 = vector.load %arg1[%c0, %c0_0] : memref<8x32xf32, #tpu.memory_space<vmem>>, vector<8x32xf32>
    %c0_1 = arith.constant 0 : index
    %c0_2 = arith.constant 0 : index
    %1 = vector.load %arg2[%c0_1, %c0_2] : memref<32x20xf32, #tpu.memory_space<vmem>>, vector<32x20xf32>
    %cst = arith.constant dense<0.000000e+00> : vector<8x20xf32>
    %2 = tpu.matmul %0, %1, %cst {dimension_numbers = #tpu.dot_dimension_numbers<[1], [0], [0], [1], [0, 0, 1, 1], [], []>} : vector<8x32xf32>, vector<32x20xf32>, vector<8x20xf32> -> vector<8x20xf32>
    %c0_3 = arith.constant 0 : index
    %c0_4 = arith.constant 0 : index
    %3 = vector.load %arg3[%c0_3, %c0_4] : memref<1x20xf32, #tpu.memory_space<vmem>>, vector<1x20xf32>
    %4 = vector.broadcast %3 : vector<1x20xf32> to vector<8x20xf32>
    %5 = arith.addf %2, %4 : vector<8x20xf32>
    %cst_5 = arith.constant 0.000000e+00 : f32
    %6 = vector.broadcast %cst_5 : f32 to vector<8x20xf32>
    %7 = arith.maximumf %5, %6 : vector<8x20xf32>
    %c0_6 = arith.constant 0 : index
    %c0_7 = arith.constant 0 : index
    %8 = vector.load %arg4[%c0_6, %c0_7] : memref<1x20xf32, #tpu.memory_space<vmem>>, vector<1x20xf32>
    %9 = vector.broadcast %8 : vector<1x20xf32> to vector<8x20xf32>
    %10 = arith.mulf %7, %9 : vector<8x20xf32>
    %cst_8 = arith.constant dense<0.000000e+00> : vector<8xf32>
    %11 = vector.multi_reduction <add>, %10, %cst_8 [1] : vector<8x20xf32> to vector<8xf32>
    %12 = vector.shape_cast %11 : vector<8xf32> to vector<8x1xf32>
    %c0_9 = arith.constant 0 : index
    %c0_10 = arith.constant 0 : index
    %13 = vector.load %arg5[%c0_9, %c0_10] : memref<1x1xf32, #tpu.memory_space<vmem>>, vector<1x1xf32>
    %14 = vector.broadcast %13 : vector<1x1xf32> to vector<8x1xf32>
    %15 = arith.addf %12, %14 : vector<8x1xf32>
    %cst_11 = arith.constant 5.000000e-01 : f32
    %16 = vector.broadcast %cst_11 : f32 to vector<8x1xf32>
    %17 = arith.mulf %16, %15 : vector<8x1xf32>
    %18 = math.tanh %17 : vector<8x1xf32>
    %cst_12 = arith.constant 1.000000e+00 : f32
    %19 = vector.broadcast %cst_12 : f32 to vector<8x1xf32>
    %20 = arith.addf %18, %19 : vector<8x1xf32>
    %cst_13 = arith.constant 5.000000e-01 : f32
    %21 = vector.broadcast %cst_13 : f32 to vector<8x1xf32>
    %22 = arith.mulf %21, %20 : vector<8x1xf32>
    %c0_14 = arith.constant 0 : index
    %c0_15 = arith.constant 0 : index
    %23 = vector.load %arg6[%c0_14, %c0_15] : memref<8x1xf32, #tpu.memory_space<vmem>>, vector<8x1xf32>
    tpu.vector_store %arg6[%c0_14, %c0_15], %22 {strides = array<i32>} : memref<8x1xf32, #tpu.memory_space<vmem>>, vector<8x1xf32>,
    return
  }
  func.func @transform_0(%arg0: i32) -> (i32, i32) {
    %c0_i32 = arith.constant 0 : i32
    %c0_i32_0 = arith.constant 0 : i32
    return %arg0, %c0_i32 : i32, i32
  }
  func.func @transform_1(%arg0: i32) -> (i32, i32) {
    %c0_i32 = arith.constant 0 : i32
    %c0_i32_0 = arith.constant 0 : i32
    %c0_i32_1 = arith.constant 0 : i32
    return %c0_i32, %c0_i32_0 : i32, i32
  }
  func.func @transform_2(%arg0: i32) -> (i32, i32) {
    %c0_i32 = arith.constant 0 : i32
    %c0_i32_0 = arith.constant 0 : i32
    %c0_i32_1 = arith.constant 0 : i32
    return %c0_i32, %c0_i32_0 : i32, i32
  }
  func.func @transform_3(%arg0: i32) -> (i32, i32) {
    %c0_i32 = arith.constant 0 : i32
    %c0_i32_0 = arith.constant 0 : i32
    %c0_i32_1 = arith.constant 0 : i32
    return %c0_i32, %c0_i32_0 : i32, i32
  }
  func.func @transform_4(%arg0: i32) -> (i32, i32) {
    %c0_i32 = arith.constant 0 : i32
    %c0_i32_0 = arith.constant 0 : i32
    %c0_i32_1 = arith.constant 0 : i32
    return %c0_i32, %c0_i32_0 : i32, i32
  }
  func.func @transform_5(%arg0: i32) -> (i32, i32) {
    %c0_i32 = arith.constant 0 : i32
    %c0_i32_0 = arith.constant 0 : i32
    return %arg0, %c0_i32 : i32, i32
  }
}

</mosaic_0001>

<bundles_post_ra>
// kernel: tpu_custom_call.1
= control target key start
LH: loop header
LB: loop body
LE: loop exit
PB: predicated region body
PF: predicated region fallthrough
CT: control target
= control target key end

     0   :  { %v163_v0 = vmov 0.0   ;;  %vm164_vm0 = vmmov 0   ;;  %vm34_vm1 = vcmask 261120   ;;  %vm117_vm2 = vcmask 162816   ;;  %s222_s1 = inlined_call_operand.vmem [shape: f32[32,20], index: 1, kind: input, shape index: {}]   ;;  %s223_s0 = inlined_call_operand.vmem [shape: f32[8,32], index: 0, kind: input, shape index: {}]   ;;  %s224_s4 = inlined_call_operand.<no memory space> [shape: f32[1,1], index: 4, kind: input, shape index: {}]   ;;  %s225_s2 = inlined_call_operand.vmem [shape: f32[1,20], index: 2, kind: input, shape index: {}]   ;;  %s226_s3 = inlined_call_operand.vmem [shape: f32[1,20], index: 3, kind: input, shape index: {}]   ;;  %s227_s5 = inlined_call_operand.vmem [shape: f32[8,1], index: 5, kind: output, shape index: {}]  }
   0x1   :  { %148 = vmatprep.subr.mxu0 %v163_v0  ;;  %v26_v1 = vld [vmem:[%s222_s1 + $0x18] sm:$0xff]  ;;  %v25_v2 = vld [vmem:[%s222_s1 + $0x10] sm:$0xff]  ;;  %156 = vmatprep.mubr.msk.f32.mxu0 %vm164_vm0, %v163_v0  ;;  %v24_v3 = vld [vmem:[%s222_s1 + $0x8] sm:$0xff]  ;;  %v10_v6 = vstv %s224_s4  ;;  %vm133_vm3 = vcmask 7168  }
   0x2   :  { %149 = vmatpush3.msra.mxu0 %v26_v1  ;;  %v23_v4 = vld [vmem:[%s222_s1] sm:$0xff]  ;;  %11 = vst [vmem:[#allocation2] sm:$0x1] %v10_v6 }
   0x3   :  { %150 = vmatprep.subr.mxu0 %v163_v0  ;;  %v22_v5 = vld [vmem:[%s223_s0] sm:$0xff] }
   0x4   :  { %151 = vmatpush3.msra.mxu0 %v25_v2  ;;  %v139_v7 = vld [vmem:[%s225_s2] ss:$0 sm:$0xff] }
   0x5   :  { %152 = vmatprep.subr.mxu0 %v163_v0  ;;  %v141_v11 = vld [vmem:[%s226_s3] ss:$0 sm:$0xff] }
   0x6   :  { %153 = vmatpush3.msra.mxu0 %v24_v3 }
   0x7   :  { %154 = vmatprep.subr.mxu0 %v163_v0 }
   0x8   :  { %155 = vmatpush3.msra.mxu0 %v23_v4 }
   0x9   :  { %157 = vmatmul.mubr.msk.f32.vlgmr.msra.gmra.mxu0 %vm34_vm1, %v22_v5  ;;  %v142_v15 = vld [vmem:[#allocation2] ss:$0 sm:$0xff] }
  0xc9   :  { %v104_v8 = vpop.f32.mrf.mxu0 }
  0xca   :  { %v105_v9 = vadd.f32 %v139_v7, %v104_v8 }
  0xcb   :  { %v158_v10 = vpop.f32.mrf.mxu0 }
  0xcc   :  { %v108_v12 = vmax.f32 %v105_v9, 0.0 }
  0xce   :  { %v116_v13 = vmul.f32 %v141_v11, %v108_v12 }
  0xd0   :  { %v118_v14 = vsel %vm117_vm2, %v116_v13, 0.0 }
  0xd1   :  { %119 = vadd.xlane.f32.xlu0 %v118_v14 }
 0x15a   :  { %v120_v16 = vpop.xlane.xlu0 %119 }
 0x15b   :  { %v128_v17 = vadd.f32 %v142_v15, %v120_v16 }
 0x15d   :  { %v129_v18 = vmul.f32 0.5, %v128_v17 }
 0x15f   :  { %161 = vtanh.f32 %v129_v18 }
 0x16c   :  { %v162_v19 = vpop.eup %161 }
 0x16d   :  { %v131_v20 = vadd.f32 1.0, %v162_v19 }
 0x16f   :  { %v132_v21 = vmul.f32 0.5, %v131_v20 }
 0x171   :  { %134 = vst.msk [vmem:[%s227_s5] sm:$0xff] %vm133_vm3, %v132_v21 }

</bundles_post_ra>
